<compile_context>
chip_gen: v5e
topology: v5e:2x2
jax: 0.10.0
libtpu: 0.0.40
codegen_flags: <defaults>
</compile_context>

<pallas_src>
import functools

import jax
import jax.numpy as jnp
from jax.experimental import pallas as pl
from jax.experimental.pallas import tpu as pltpu

_EPS = 1e-5


def _tpu_generation():
    """Best-effort TPU generation detection (0 = unknown -> conservative)."""
    try:
        kind = jax.devices()[0].device_kind.lower()
    except Exception:
        return 0
    for g in (7, 6, 5, 4):
        if f"v{g}" in kind or f"tpu{g}" in kind or f"tpu {g}" in kind:
            return g
    return 0


def _pick_tile(total, target, align):
    """Largest tile <= min(total, target) that divides `total` and is a
    multiple of `align`; falls back to the full extent (always legal)."""
    if total <= target:
        return total
    t = (min(target, total) // align) * align
    while t >= align:
        if total % t == 0:
            return t
        t -= align
    return total


# --------------------------------------------------------------------------- #
# Kernel A: LayerNorm1 + fused Q/K/V projection, row-parallel over B*T rows.
# --------------------------------------------------------------------------- #
def _ln_qkv_kernel(x_ref, g1_ref, b1_ref, wqkv_ref, xn_ref, qkv_ref):
    x = x_ref[...].astype(jnp.float32)                      # (TR, D)
    mu = jnp.mean(x, axis=-1, keepdims=True)
    xc = x - mu
    var = jnp.mean(xc * xc, axis=-1, keepdims=True)
    xn = xc * jax.lax.rsqrt(var + _EPS) * g1_ref[...] + b1_ref[...]
    xn_ref[...] = xn.astype(xn_ref.dtype)                   # f32 (needed for residual)
    # bf16 operands on the MXU, f32 accumulation; Wqkv is pre-transposed (D, 3D).
    qkv = jnp.dot(xn.astype(jnp.bfloat16), wqkv_ref[...],
                  preferred_element_type=jnp.float32)
    qkv_ref[...] = qkv.astype(qkv_ref.dtype)                # bf16 store (halves HBM)


# --------------------------------------------------------------------------- #
# Kernel B: flash attention (online softmax), heads batched on a leading axis,
#           grid = (batch, query-tile, kv-tile["arbitrary"]).
# --------------------------------------------------------------------------- #
def _flash_attention_kernel(q_ref, kt_ref, v_ref, o_ref, m_sc, l_sc, acc_sc,
                            *, bf16_exp):
    ki = pl.program_id(2)

    @pl.when(ki == 0)
    def _init():
        m_sc[...] = jnp.full(m_sc.shape, -jnp.inf, jnp.float32)
        l_sc[...] = jnp.zeros(l_sc.shape, jnp.float32)
        acc_sc[...] = jnp.zeros(acc_sc.shape, jnp.float32)

    q = q_ref[0]                                             # (H, TQ, dh)  bf16
    kt = kt_ref[0]                                           # (H, dh, TK)  bf16 (pre-transposed)
    v = v_ref[0]                                             # (H, TK, dh)  bf16

    # NOTE: no 1/sqrt(dh) scaling — the PyTorch module does not scale QK^T.
    s = jnp.einsum("hqd,hdk->hqk", q, kt,
                   preferred_element_type=jnp.float32)       # (H, TQ, TK) f32

    m_prev = m_sc[...]
    m_new = jnp.maximum(m_prev, jnp.max(s, axis=-1, keepdims=True))
    alpha = jnp.exp(m_prev - m_new)                          # f32 rescale of old stats
    s = s - m_new
    if bf16_exp:
        # v6e / v7x: EUP has a bf16 path (~2x transcendental throughput).
        p = jnp.exp(s.astype(jnp.bfloat16))                  # (H, TQ, TK) bf16
        p_sum = jnp.sum(p.astype(jnp.float32), axis=-1, keepdims=True)
    else:
        # v5e / unknown: no bf16 EUP — keep softmax math in f32.
        p_f32 = jnp.exp(s)
        p_sum = jnp.sum(p_f32, axis=-1, keepdims=True)
        p = p_f32.astype(jnp.bfloat16)                       # MXU operand

    l_sc[...] = alpha * l_sc[...] + p_sum
    acc_sc[...] = alpha * acc_sc[...] + jnp.einsum(
        "hqk,hkd->hqd", p, v, preferred_element_type=jnp.float32)
    m_sc[...] = m_new

    @pl.when(ki == pl.num_programs(2) - 1)
    def _finalize():
        inv_l = pl.reciprocal(l_sc[...], approx=True)        # EUP slot
        o_ref[0] = (acc_sc[...] * inv_l).astype(o_ref.dtype)  # bf16 store


# --------------------------------------------------------------------------- #
# Kernel C: residual + LayerNorm2 + FFN + residual, row-parallel over B*T rows.
# --------------------------------------------------------------------------- #
def _ffn_kernel(xn_ref, att_ref, g2_ref, b2_ref,
                wf1_ref, bf1_ref, wf2_ref, bf2_ref, o_ref):
    xt = xn_ref[...] + att_ref[...].astype(jnp.float32)      # residual with normed x
    mu = jnp.mean(xt, axis=-1, keepdims=True)
    xc = xt - mu
    var = jnp.mean(xc * xc, axis=-1, keepdims=True)
    xtn = xc * jax.lax.rsqrt(var + _EPS) * g2_ref[...] + b2_ref[...]
    h = jnp.dot(xtn.astype(jnp.bfloat16), wf1_ref[...],
                preferred_element_type=jnp.float32) + bf1_ref[...]
    h = jnp.maximum(h, 0.0)                                  # ReLU; dropout = identity (eval)
    f = jnp.dot(h.astype(jnp.bfloat16), wf2_ref[...],
                preferred_element_type=jnp.float32) + bf2_ref[...]
    o_ref[...] = (xtn + f).astype(o_ref.dtype)


# --------------------------------------------------------------------------- #
# Wrapper
# --------------------------------------------------------------------------- #
def tattention_forward(x, params, *, nhead, row_tile=None, q_tile=None,
                       kv_tile=None, bf16_exp=None):
    """x: (B, T, D) float32.  params: dict of weights (see init_params)."""
    B, T, D = x.shape
    H = nhead
    assert D % H == 0, "batched-head kernel requires d_model % nhead == 0"
    # TODO(synk): PyTorch gives the last head the remainder when d_model % nhead != 0;
    #             that (rare) unequal-head case is not handled by the batched kernel.
    dh = D // H

    gen = _tpu_generation()
    if bf16_exp is None:
        bf16_exp = gen in (6, 7)             # bf16 EUP path on v6e/v7x only
    big_vmem = gen in (4, 5, 6)              # 128 MiB physical VMEM per core
    vmem_limit = (64 if big_vmem else 40) * 1024 * 1024   # leave headroom on v7x (64 MiB)

    R = B * T
    TR = row_tile if row_tile is not None else _pick_tile(R, 512 if big_vmem else 256, 8)
    TQ = q_tile if q_tile is not None else _pick_tile(T, 256, 8)
    TK = kv_tile if kv_tile is not None else _pick_tile(T, 512 if big_vmem else 256, 128)
    assert R % TR == 0 and (TR % 8 == 0 or TR == R)
    assert T % TQ == 0 and (TQ % 8 == 0 or TQ == T)
    assert T % TK == 0 and (TK % 128 == 0 or TK == T)

    cp_rows = pltpu.CompilerParams(dimension_semantics=("parallel",),
                                   vmem_limit_bytes=vmem_limit)
    cp_attn = pltpu.CompilerParams(
        dimension_semantics=("parallel", "parallel", "arbitrary"),
        vmem_limit_bytes=vmem_limit)

    # ---- weight preprocessing (once, wrapper-side): pre-transpose to (in, out),
    #      fuse Q/K/V, cast matmul weights to bf16 for the MXU. ----
    wqkv = jnp.concatenate([params["wq"].T, params["wk"].T, params["wv"].T],
                           axis=1).astype(jnp.bfloat16)      # (D, 3D)
    wf1 = params["wf1"].T.astype(jnp.bfloat16)               # (D, D)
    wf2 = params["wf2"].T.astype(jnp.bfloat16)               # (D, D)
    g1, b1 = params["g1"], params["b1"]                      # (1, D) f32
    g2, b2 = params["g2"], params["b2"]
    bf1, bf2 = params["bf1"], params["bf2"]

    x2 = x.reshape(R, D)

    # NOTE: weight/param specs below have constant index_maps, so their tiles are
    # DMA'd once and stay resident across grid steps.

    # ---------------- Kernel A: LN1 + fused QKV projection ----------------
    xn, qkv = pl.pallas_call(
        _ln_qkv_kernel,
        out_shape=(jax.ShapeDtypeStruct((R, D), jnp.float32),
                   jax.ShapeDtypeStruct((R, 3 * D), jnp.bfloat16)),
        grid=(R // TR,),
        in_specs=[pl.BlockSpec((TR, D), lambda r: (r, 0)),        # x rows
                  pl.BlockSpec((1, D), lambda r: (0, 0)),         # ln1 gamma
                  pl.BlockSpec((1, D), lambda r: (0, 0)),         # ln1 beta
                  pl.BlockSpec((D, 3 * D), lambda r: (0, 0))],    # fused Wqkv (bf16)
        out_specs=(pl.BlockSpec((TR, D), lambda r: (r, 0)),
                   pl.BlockSpec((TR, 3 * D), lambda r: (r, 0))),
        compiler_params=cp_rows,
    )(x2, g1, b1, wqkv)

    # Wrapper-side layout plumbing (all bf16): split heads; pre-transpose K so
    # the score einsum is a plain (TQ, dh) x (dh, TK) MXU matmul per head.
    q, k, v = jnp.split(qkv, 3, axis=-1)
    qh = q.reshape(B, T, H, dh).transpose(0, 2, 1, 3)        # (B, H, T, dh)
    kt = k.reshape(B, T, H, dh).transpose(0, 2, 3, 1)        # (B, H, dh, T)
    vh = v.reshape(B, T, H, dh).transpose(0, 2, 1, 3)        # (B, H, T, dh)

    # ---------------- Kernel B: flash attention (KV-tiled online softmax) --
    att = pl.pallas_call(
        functools.partial(_flash_attention_kernel, bf16_exp=bf16_exp),
        out_shape=jax.ShapeDtypeStruct((B, H, T, dh), jnp.bfloat16),
        grid=(B, T // TQ, T // TK),
        in_specs=[pl.BlockSpec((1, H, TQ, dh), lambda b, qi, ki: (b, 0, qi, 0)),
                  pl.BlockSpec((1, H, dh, TK), lambda b, qi, ki: (b, 0, 0, ki)),
                  pl.BlockSpec((1, H, TK, dh), lambda b, qi, ki: (b, 0, ki, 0))],
        out_specs=pl.BlockSpec((1, H, TQ, dh), lambda b, qi, ki: (b, 0, qi, 0)),
        scratch_shapes=[pltpu.VMEM((H, TQ, 1), jnp.float32),    # running max
                        pltpu.VMEM((H, TQ, 1), jnp.float32),    # running sum
                        pltpu.VMEM((H, TQ, dh), jnp.float32)],  # output accumulator
        compiler_params=cp_attn,
    )(qh, kt, vh)

    # Merge heads back to (R, D) — wrapper-side layout plumbing (bf16).
    att2 = att.transpose(0, 2, 1, 3).reshape(R, D)

    # ---------------- Kernel C: residual + LN2 + FFN + residual -----------
    out = pl.pallas_call(
        _ffn_kernel,
        out_shape=jax.ShapeDtypeStruct((R, D), x.dtype),
        grid=(R // TR,),
        in_specs=[pl.BlockSpec((TR, D), lambda r: (r, 0)),        # xn (normed x, f32)
                  pl.BlockSpec((TR, D), lambda r: (r, 0)),        # attention output (bf16)
                  pl.BlockSpec((1, D), lambda r: (0, 0)),         # ln2 gamma
                  pl.BlockSpec((1, D), lambda r: (0, 0)),         # ln2 beta
                  pl.BlockSpec((D, D), lambda r: (0, 0)),         # Wf1 (in,out) bf16
                  pl.BlockSpec((1, D), lambda r: (0, 0)),         # bf1
                  pl.BlockSpec((D, D), lambda r: (0, 0)),         # Wf2 (in,out) bf16
                  pl.BlockSpec((1, D), lambda r: (0, 0))],        # bf2
        out_specs=pl.BlockSpec((TR, D), lambda r: (r, 0)),
        compiler_params=cp_rows,
    )(xn, att2, g2, b2, wf1, bf1, wf2, bf2)

    return out.reshape(B, T, D)


# --------------------------------------------------------------------------- #
# Parameters & pure-JAX reference (mirrors the PyTorch forward, f32, eval mode)
# --------------------------------------------------------------------------- #
def init_params(key, d_model):
    ks = jax.random.split(key, 8)
    s = 1.0 / jnp.sqrt(d_model)
    return {
        "wq": jax.random.uniform(ks[0], (d_model, d_model), jnp.float32, -s, s),
        "wk": jax.random.uniform(ks[1], (d_model, d_model), jnp.float32, -s, s),
        "wv": jax.random.uniform(ks[2], (d_model, d_model), jnp.float32, -s, s),
        "g1": jnp.ones((1, d_model), jnp.float32),
        "b1": jnp.zeros((1, d_model), jnp.float32),
        "g2": jnp.ones((1, d_model), jnp.float32),
        "b2": jnp.zeros((1, d_model), jnp.float32),
        "wf1": jax.random.uniform(ks[3], (d_model, d_model), jnp.float32, -s, s),
        "bf1": jax.random.uniform(ks[4], (1, d_model), jnp.float32, -s, s),
        "wf2": jax.random.uniform(ks[5], (d_model, d_model), jnp.float32, -s, s),
        "bf2": jax.random.uniform(ks[6], (1, d_model), jnp.float32, -s, s),
    }


def tattention_ref(x, params, *, nhead):
    eps = 1e-5

    def ln(z, g, b):
        mu = jnp.mean(z, axis=-1, keepdims=True)
        var = jnp.mean((z - mu) ** 2, axis=-1, keepdims=True)
        return (z - mu) / jnp.sqrt(var + eps) * g + b

    D = x.shape[-1]
    dim = D // nhead
    xn = ln(x, params["g1"][0], params["b1"][0])
    q = xn @ params["wq"].T
    k = xn @ params["wk"].T
    v = xn @ params["wv"].T
    outs = []
    for i in range(nhead):
        lo = i * dim
        hi = D if i == nhead - 1 else (i + 1) * dim
        qh, kh, vh = q[..., lo:hi], k[..., lo:hi], v[..., lo:hi]
        a = jax.nn.softmax(jnp.einsum("btd,bsd->bts", qh, kh), axis=-1)
        outs.append(jnp.einsum("bts,bsd->btd", a, vh))
    att = jnp.concatenate(outs, axis=-1)
    xt = ln(xn + att, params["g2"][0], params["b2"][0])
    h = jnp.maximum(xt @ params["wf1"].T + params["bf1"][0], 0.0)
    f = h @ params["wf2"].T + params["bf2"][0]
    return xt + f


if __name__ == "__main__":
    # d_model=32, nhead=4, seq=8, batch=2; dropout in eval mode (identity).
    B, T, D, NHEAD = 2, 8, 32, 4
    key = jax.random.PRNGKey(0)
    kx, kp = jax.random.split(key)
    x = jax.random.normal(kx, (B, T, D), jnp.float32)
    params = init_params(kp, D)

    fwd = jax.jit(functools.partial(tattention_forward, nhead=NHEAD))
    out = jax.block_until_ready(fwd(x, params))

    ref = tattention_ref(x, params, nhead=NHEAD)
    assert out.shape == (B, T, D)
    # Matmul operands AND the qkv/attention intermediates are bf16 (f32 accumulation
    # & softmax statistics) => compare against the f32 reference at bf16 tolerance.
    assert jnp.allclose(out, ref, rtol=5e-2, atol=1e-1), "mismatch vs JAX reference"
    print("KERNEL_OK")
</pallas_src>

<mosaic_0001>
module attributes {stable_mosaic.version = 11 : i64} {
  func.func @_ln_qkv_kernel(%arg0: i32, %arg1: memref<16x32xf32, #tpu.memory_space<vmem>>, %arg2: memref<1x32xf32, #tpu.memory_space<vmem>>, %arg3: memref<1x32xf32, #tpu.memory_space<vmem>>, %arg4: memref<32x96xbf16, #tpu.memory_space<vmem>>, %arg5: memref<16x32xf32, #tpu.memory_space<vmem>>, %arg6: memref<16x96xbf16, #tpu.memory_space<vmem>>) attributes {dimension_semantics = [#tpu.dimension_semantics<parallel>], iteration_bounds = array<i64: 1>, scalar_prefetch = 0 : i64, scratch_operands = 0 : i64, tpu.core_type = #tpu.core_type<tc>, window_params = [{transform_indices = @transform_0, window_bounds = array<i64: 16, 32>}, {pipeline_mode = #tpu.pipeline_mode<synchronous>, transform_indices = @transform_1, window_bounds = array<i64: 1, 32>}, {pipeline_mode = #tpu.pipeline_mode<synchronous>, transform_indices = @transform_2, window_bounds = array<i64: 1, 32>}, {pipeline_mode = #tpu.pipeline_mode<synchronous>, transform_indices = @transform_3, window_bounds = array<i64: 32, 96>}, {transform_indices = @transform_4, window_bounds = array<i64: 16, 32>}, {transform_indices = @transform_5, window_bounds = array<i64: 16, 96>}]} {
    %c0 = arith.constant 0 : index
    %c0_0 = arith.constant 0 : index
    %0 = vector.load %arg1[%c0, %c0_0] : memref<16x32xf32, #tpu.memory_space<vmem>>, vector<16x32xf32>
    %cst = arith.constant dense<0.000000e+00> : vector<16xf32>
    %1 = vector.multi_reduction <add>, %0, %cst [1] : vector<16x32xf32> to vector<16xf32>
    %2 = vector.shape_cast %1 : vector<16xf32> to vector<16x1xf32>
    %cst_1 = arith.constant 3.200000e+01 : f32
    %3 = vector.broadcast %cst_1 : f32 to vector<16x1xf32>
    %4 = arith.divf %2, %3 : vector<16x1xf32>
    %5 = vector.broadcast %4 : vector<16x1xf32> to vector<16x32xf32>
    %6 = arith.subf %0, %5 : vector<16x32xf32>
    %7 = arith.mulf %6, %6 : vector<16x32xf32>
    %cst_2 = arith.constant dense<0.000000e+00> : vector<16xf32>
    %8 = vector.multi_reduction <add>, %7, %cst_2 [1] : vector<16x32xf32> to vector<16xf32>
    %9 = vector.shape_cast %8 : vector<16xf32> to vector<16x1xf32>
    %cst_3 = arith.constant 3.200000e+01 : f32
    %10 = vector.broadcast %cst_3 : f32 to vector<16x1xf32>
    %11 = arith.divf %9, %10 : vector<16x1xf32>
    %cst_4 = arith.constant 9.99999974E-6 : f32
    %12 = vector.broadcast %cst_4 : f32 to vector<16x1xf32>
    %13 = arith.addf %11, %12 : vector<16x1xf32>
    %14 = math.rsqrt %13 : vector<16x1xf32>
    %15 = vector.broadcast %14 : vector<16x1xf32> to vector<16x32xf32>
    %16 = arith.mulf %6, %15 : vector<16x32xf32>
    %c0_5 = arith.constant 0 : index
    %c0_6 = arith.constant 0 : index
    %17 = vector.load %arg2[%c0_5, %c0_6] : memref<1x32xf32, #tpu.memory_space<vmem>>, vector<1x32xf32>
    %18 = vector.broadcast %17 : vector<1x32xf32> to vector<16x32xf32>
    %19 = arith.mulf %16, %18 : vector<16x32xf32>
    %c0_7 = arith.constant 0 : index
    %c0_8 = arith.constant 0 : index
    %20 = vector.load %arg3[%c0_7, %c0_8] : memref<1x32xf32, #tpu.memory_space<vmem>>, vector<1x32xf32>
    %21 = vector.broadcast %20 : vector<1x32xf32> to vector<16x32xf32>
    %22 = arith.addf %19, %21 : vector<16x32xf32>
    %c0_9 = arith.constant 0 : index
    %c0_10 = arith.constant 0 : index
    %23 = vector.load %arg5[%c0_9, %c0_10] : memref<16x32xf32, #tpu.memory_space<vmem>>, vector<16x32xf32>
    tpu.vector_store %arg5[%c0_9, %c0_10], %22 {strides = array<i32>} : memref<16x32xf32, #tpu.memory_space<vmem>>, vector<16x32xf32>,
    %24 = arith.truncf %22 : vector<16x32xf32> to vector<16x32xbf16>
    %c0_11 = arith.constant 0 : index
    %c0_12 = arith.constant 0 : index
    %25 = vector.load %arg4[%c0_11, %c0_12] : memref<32x96xbf16, #tpu.memory_space<vmem>>, vector<32x96xbf16>
    %cst_13 = arith.constant dense<0.000000e+00> : vector<16x96xf32>
    %26 = tpu.matmul %24, %25, %cst_13 {dimension_numbers = #tpu.dot_dimension_numbers<[1], [0], [0], [1], [0, 0, 1, 1], [], []>} : vector<16x32xbf16>, vector<32x96xbf16>, vector<16x96xf32> -> vector<16x96xf32>
    %27 = arith.truncf %26 : vector<16x96xf32> to vector<16x96xbf16>
    %c0_14 = arith.constant 0 : index
    %c0_15 = arith.constant 0 : index
    %28 = vector.load %arg6[%c0_14, %c0_15] : memref<16x96xbf16, #tpu.memory_space<vmem>>, vector<16x96xbf16>
    tpu.vector_store %arg6[%c0_14, %c0_15], %27 {strides = array<i32>} : memref<16x96xbf16, #tpu.memory_space<vmem>>, vector<16x96xbf16>,
    return
  }
  func.func @transform_0(%arg0: i32) -> (i32, i32) {
    %c0_i32 = arith.constant 0 : i32
    %c0_i32_0 = arith.constant 0 : i32
    return %arg0, %c0_i32 : i32, i32
  }
  func.func @transform_1(%arg0: i32) -> (i32, i32) {
    %c0_i32 = arith.constant 0 : i32
    %c0_i32_0 = arith.constant 0 : i32
    %c0_i32_1 = arith.constant 0 : i32
    return %c0_i32, %c0_i32_0 : i32, i32
  }
  func.func @transform_2(%arg0: i32) -> (i32, i32) {
    %c0_i32 = arith.constant 0 : i32
    %c0_i32_0 = arith.constant 0 : i32
    %c0_i32_1 = arith.constant 0 : i32
    return %c0_i32, %c0_i32_0 : i32, i32
  }
  func.func @transform_3(%arg0: i32) -> (i32, i32) {
    %c0_i32 = arith.constant 0 : i32
    %c0_i32_0 = arith.constant 0 : i32
    %c0_i32_1 = arith.constant 0 : i32
    return %c0_i32, %c0_i32_0 : i32, i32
  }
  func.func @transform_4(%arg0: i32) -> (i32, i32) {
    %c0_i32 = arith.constant 0 : i32
    %c0_i32_0 = arith.constant 0 : i32
    return %arg0, %c0_i32 : i32, i32
  }
  func.func @transform_5(%arg0: i32) -> (i32, i32) {
    %c0_i32 = arith.constant 0 : i32
    %c0_i32_0 = arith.constant 0 : i32
    return %arg0, %c0_i32 : i32, i32
  }
}

module attributes {stable_mosaic.version = 11 : i64} {
  func.func @_ffn_kernel(%arg0: i32, %arg1: memref<16x32xf32, #tpu.memory_space<vmem>>, %arg2: memref<16x32xbf16, #tpu.memory_space<vmem>>, %arg3: memref<1x32xf32, #tpu.memory_space<vmem>>, %arg4: memref<1x32xf32, #tpu.memory_space<vmem>>, %arg5: memref<32x32xbf16, #tpu.memory_space<vmem>>, %arg6: memref<1x32xf32, #tpu.memory_space<vmem>>, %arg7: memref<32x32xbf16, #tpu.memory_space<vmem>>, %arg8: memref<1x32xf32, #tpu.memory_space<vmem>>, %arg9: memref<16x32xf32, #tpu.memory_space<vmem>>) attributes {dimension_semantics = [#tpu.dimension_semantics<parallel>], iteration_bounds = array<i64: 1>, scalar_prefetch = 0 : i64, scratch_operands = 0 : i64, tpu.core_type = #tpu.core_type<tc>, window_params = [{transform_indices = @transform_0, window_bounds = array<i64: 16, 32>}, {transform_indices = @transform_1, window_bounds = array<i64: 16, 32>}, {pipeline_mode = #tpu.pipeline_mode<synchronous>, transform_indices = @transform_2, window_bounds = array<i64: 1, 32>}, {pipeline_mode = #tpu.pipeline_mode<synchronous>, transform_indices = @transform_3, window_bounds = array<i64: 1, 32>}, {pipeline_mode = #tpu.pipeline_mode<synchronous>, transform_indices = @transform_4, window_bounds = array<i64: 32, 32>}, {pipeline_mode = #tpu.pipeline_mode<synchronous>, transform_indices = @transform_5, window_bounds = array<i64: 1, 32>}, {pipeline_mode = #tpu.pipeline_mode<synchronous>, transform_indices = @transform_6, window_bounds = array<i64: 32, 32>}, {pipeline_mode = #tpu.pipeline_mode<synchronous>, transform_indices = @transform_7, window_bounds = array<i64: 1, 32>}, {transform_indices = @transform_8, window_bounds = array<i64: 16, 32>}]} {
    %c0 = arith.constant 0 : index
    %c0_0 = arith.constant 0 : index
    %0 = vector.load %arg1[%c0, %c0_0] : memref<16x32xf32, #tpu.memory_space<vmem>>, vector<16x32xf32>
    %c0_1 = arith.constant 0 : index
    %c0_2 = arith.constant 0 : index
    %1 = vector.load %arg2[%c0_1, %c0_2] : memref<16x32xbf16, #tpu.memory_space<vmem>>, vector<16x32xbf16>
    %2 = arith.extf %1 : vector<16x32xbf16> to vector<16x32xf32>
    %3 = arith.addf %0, %2 : vector<16x32xf32>
    %cst = arith.constant dense<0.000000e+00> : vector<16xf32>
    %4 = vector.multi_reduction <add>, %3, %cst [1] : vector<16x32xf32> to vector<16xf32>
    %5 = vector.shape_cast %4 : vector<16xf32> to vector<16x1xf32>
    %cst_3 = arith.constant 3.200000e+01 : f32
    %6 = vector.broadcast %cst_3 : f32 to vector<16x1xf32>
    %7 = arith.divf %5, %6 : vector<16x1xf32>
    %8 = vector.broadcast %7 : vector<16x1xf32> to vector<16x32xf32>
    %9 = arith.subf %3, %8 : vector<16x32xf32>
    %10 = arith.mulf %9, %9 : vector<16x32xf32>
    %cst_4 = arith.constant dense<0.000000e+00> : vector<16xf32>
    %11 = vector.multi_reduction <add>, %10, %cst_4 [1] : vector<16x32xf32> to vector<16xf32>
    %12 = vector.shape_cast %11 : vector<16xf32> to vector<16x1xf32>
    %cst_5 = arith.constant 3.200000e+01 : f32
    %13 = vector.broadcast %cst_5 : f32 to vector<16x1xf32>
    %14 = arith.divf %12, %13 : vector<16x1xf32>
    %cst_6 = arith.constant 9.99999974E-6 : f32
    %15 = vector.broadcast %cst_6 : f32 to vector<16x1xf32>
    %16 = arith.addf %14, %15 : vector<16x1xf32>
    %17 = math.rsqrt %16 : vector<16x1xf32>
    %18 = vector.broadcast %17 : vector<16x1xf32> to vector<16x32xf32>
    %19 = arith.mulf %9, %18 : vector<16x32xf32>
    %c0_7 = arith.constant 0 : index
    %c0_8 = arith.constant 0 : index
    %20 = vector.load %arg3[%c0_7, %c0_8] : memref<1x32xf32, #tpu.memory_space<vmem>>, vector<1x32xf32>
    %21 = vector.broadcast %20 : vector<1x32xf32> to vector<16x32xf32>
    %22 = arith.mulf %19, %21 : vector<16x32xf32>
    %c0_9 = arith.constant 0 : index
    %c0_10 = arith.constant 0 : index
    %23 = vector.load %arg4[%c0_9, %c0_10] : memref<1x32xf32, #tpu.memory_space<vmem>>, vector<1x32xf32>
    %24 = vector.broadcast %23 : vector<1x32xf32> to vector<16x32xf32>
    %25 = arith.addf %22, %24 : vector<16x32xf32>
    %26 = arith.truncf %25 : vector<16x32xf32> to vector<16x32xbf16>
    %c0_11 = arith.constant 0 : index
    %c0_12 = arith.constant 0 : index
    %27 = vector.load %arg5[%c0_11, %c0_12] : memref<32x32xbf16, #tpu.memory_space<vmem>>, vector<32x32xbf16>
    %cst_13 = arith.constant dense<0.000000e+00> : vector<16x32xf32>
    %28 = tpu.matmul %26, %27, %cst_13 {dimension_numbers = #tpu.dot_dimension_numbers<[1], [0], [0], [1], [0, 0, 1, 1], [], []>} : vector<16x32xbf16>, vector<32x32xbf16>, vector<16x32xf32> -> vector<16x32xf32>
    %c0_14 = arith.constant 0 : index
    %c0_15 = arith.constant 0 : index
    %29 = vector.load %arg6[%c0_14, %c0_15] : memref<1x32xf32, #tpu.memory_space<vmem>>, vector<1x32xf32>
    %30 = vector.broadcast %29 : vector<1x32xf32> to vector<16x32xf32>
    %31 = arith.addf %28, %30 : vector<16x32xf32>
    %cst_16 = arith.constant 0.000000e+00 : f32
    %32 = vector.broadcast %cst_16 : f32 to vector<16x32xf32>
    %33 = arith.maximumf %31, %32 : vector<16x32xf32>
    %34 = arith.truncf %33 : vector<16x32xf32> to vector<16x32xbf16>
    %c0_17 = arith.constant 0 : index
    %c0_18 = arith.constant 0 : index
    %35 = vector.load %arg7[%c0_17, %c0_18] : memref<32x32xbf16, #tpu.memory_space<vmem>>, vector<32x32xbf16>
    %cst_19 = arith.constant dense<0.000000e+00> : vector<16x32xf32>
    %36 = tpu.matmul %34, %35, %cst_19 {dimension_numbers = #tpu.dot_dimension_numbers<[1], [0], [0], [1], [0, 0, 1, 1], [], []>} : vector<16x32xbf16>, vector<32x32xbf16>, vector<16x32xf32> -> vector<16x32xf32>
    %c0_20 = arith.constant 0 : index
    %c0_21 = arith.constant 0 : index
    %37 = vector.load %arg8[%c0_20, %c0_21] : memref<1x32xf32, #tpu.memory_space<vmem>>, vector<1x32xf32>
    %38 = vector.broadcast %37 : vector<1x32xf32> to vector<16x32xf32>
    %39 = arith.addf %36, %38 : vector<16x32xf32>
    %40 = arith.addf %25, %39 : vector<16x32xf32>
    %c0_22 = arith.constant 0 : index
    %c0_23 = arith.constant 0 : index
    %41 = vector.load %arg9[%c0_22, %c0_23] : memref<16x32xf32, #tpu.memory_space<vmem>>, vector<16x32xf32>
    tpu.vector_store %arg9[%c0_22, %c0_23], %40 {strides = array<i32>} : memref<16x32xf32, #tpu.memory_space<vmem>>, vector<16x32xf32>,
    return
  }
  func.func @transform_0(%arg0: i32) -> (i32, i32) {
    %c0_i32 = arith.constant 0 : i32
    %c0_i32_0 = arith.constant 0 : i32
    return %arg0, %c0_i32 : i32, i32
  }
  func.func @transform_1(%arg0: i32) -> (i32, i32) {
    %c0_i32 = arith.constant 0 : i32
    %c0_i32_0 = arith.constant 0 : i32
    return %arg0, %c0_i32 : i32, i32
  }
  func.func @transform_2(%arg0: i32) -> (i32, i32) {
    %c0_i32 = arith.constant 0 : i32
    %c0_i32_0 = arith.constant 0 : i32
    %c0_i32_1 = arith.constant 0 : i32
    return %c0_i32, %c0_i32_0 : i32, i32
  }
  func.func @transform_3(%arg0: i32) -> (i32, i32) {
    %c0_i32 = arith.constant 0 : i32
    %c0_i32_0 = arith.constant 0 : i32
    %c0_i32_1 = arith.constant 0 : i32
    return %c0_i32, %c0_i32_0 : i32, i32
  }
  func.func @transform_4(%arg0: i32) -> (i32, i32) {
    %c0_i32 = arith.constant 0 : i32
    %c0_i32_0 = arith.constant 0 : i32
    %c0_i32_1 = arith.constant 0 : i32
    return %c0_i32, %c0_i32_0 : i32, i32
  }
  func.func @transform_5(%arg0: i32) -> (i32, i32) {
    %c0_i32 = arith.constant 0 : i32
    %c0_i32_0 = arith.constant 0 : i32
    %c0_i32_1 = arith.constant 0 : i32
    return %c0_i32, %c0_i32_0 : i32, i32
  }
  func.func @transform_6(%arg0: i32) -> (i32, i32) {
    %c0_i32 = arith.constant 0 : i32
    %c0_i32_0 = arith.constant 0 : i32
    %c0_i32_1 = arith.constant 0 : i32
    return %c0_i32, %c0_i32_0 : i32, i32
  }
  func.func @transform_7(%arg0: i32) -> (i32, i32) {
    %c0_i32 = arith.constant 0 : i32
    %c0_i32_0 = arith.constant 0 : i32
    %c0_i32_1 = arith.constant 0 : i32
    return %c0_i32, %c0_i32_0 : i32, i32
  }
  func.func @transform_8(%arg0: i32) -> (i32, i32) {
    %c0_i32 = arith.constant 0 : i32
    %c0_i32_0 = arith.constant 0 : i32
    return %arg0, %c0_i32 : i32, i32
  }
}

module attributes {stable_mosaic.version = 11 : i64} {
  func.func @_flash_attention_kernel(%arg0: i32, %arg1: i32, %arg2: i32, %arg3: memref<1x4x8x8xbf16, #tpu.memory_space<vmem>>, %arg4: memref<1x4x8x8xbf16, #tpu.memory_space<vmem>>, %arg5: memref<1x4x8x8xbf16, #tpu.memory_space<vmem>>, %arg6: memref<1x4x8x8xbf16, #tpu.memory_space<vmem>>, %arg7: memref<4x8x1xf32, #tpu.memory_space<vmem>>, %arg8: memref<4x8x1xf32, #tpu.memory_space<vmem>>, %arg9: memref<4x8x8xf32, #tpu.memory_space<vmem>>) attributes {dimension_semantics = [#tpu.dimension_semantics<parallel>, #tpu.dimension_semantics<parallel>, #tpu.dimension_semantics<arbitrary>], iteration_bounds = array<i64: 2, 1, 1>, scalar_prefetch = 0 : i64, scratch_operands = 3 : i64, tpu.core_type = #tpu.core_type<tc>, window_params = [{transform_indices = @transform_0, window_bounds = array<i64: 1, 4, 8, 8>}, {transform_indices = @transform_1, window_bounds = array<i64: 1, 4, 8, 8>}, {transform_indices = @transform_2, window_bounds = array<i64: 1, 4, 8, 8>}, {transform_indices = @transform_3, window_bounds = array<i64: 1, 4, 8, 8>}]} {
    %c0_i32 = arith.constant 0 : i32
    %0 = arith.cmpi eq, %arg2, %c0_i32 : i32
    %1 = arith.extui %0 : i1 to i32
    %c0_i32_0 = arith.constant 0 : i32
    %2 = arith.cmpi ne, %1, %c0_i32_0 : i32
    scf.if %2 {
      %cst_35 = arith.constant 0xFF800000 : f32
      %36 = vector.broadcast %cst_35 : f32 to vector<4x8x1xf32>
      %c0_36 = arith.constant 0 : index
      %c0_37 = arith.constant 0 : index
      %c0_38 = arith.constant 0 : index
      %37 = vector.load %arg7[%c0_36, %c0_37, %c0_38] : memref<4x8x1xf32, #tpu.memory_space<vmem>>, vector<4x8x1xf32>
      tpu.vector_store %arg7[%c0_36, %c0_37, %c0_38], %36 {strides = array<i32>} : memref<4x8x1xf32, #tpu.memory_space<vmem>>, vector<4x8x1xf32>,
      %cst_39 = arith.constant 0.000000e+00 : f32
      %38 = vector.broadcast %cst_39 : f32 to vector<4x8x1xf32>
      %c0_40 = arith.constant 0 : index
      %c0_41 = arith.constant 0 : index
      %c0_42 = arith.constant 0 : index
      %39 = vector.load %arg8[%c0_40, %c0_41, %c0_42] : memref<4x8x1xf32, #tpu.memory_space<vmem>>, vector<4x8x1xf32>
      tpu.vector_store %arg8[%c0_40, %c0_41, %c0_42], %38 {strides = array<i32>} : memref<4x8x1xf32, #tpu.memory_space<vmem>>, vector<4x8x1xf32>,
      %cst_43 = arith.constant 0.000000e+00 : f32
      %40 = vector.broadcast %cst_43 : f32 to vector<4x8x8xf32>
      %c0_44 = arith.constant 0 : index
      %c0_45 = arith.constant 0 : index
      %c0_46 = arith.constant 0 : index
      %41 = vector.load %arg9[%c0_44, %c0_45, %c0_46] : memref<4x8x8xf32, #tpu.memory_space<vmem>>, vector<4x8x8xf32>
      tpu.vector_store %arg9[%c0_44, %c0_45, %c0_46], %40 {strides = array<i32>} : memref<4x8x8xf32, #tpu.memory_space<vmem>>, vector<4x8x8xf32>,
    } else {
    }
    %c0 = arith.constant 0 : index
    %c0_1 = arith.constant 0 : index
    %c0_2 = arith.constant 0 : index
    %c0_3 = arith.constant 0 : index
    %3 = vector.load %arg3[%c0, %c0_1, %c0_2, %c0_3] : memref<1x4x8x8xbf16, #tpu.memory_space<vmem>>, vector<1x4x8x8xbf16>
    %4 = vector.shape_cast %3 : vector<1x4x8x8xbf16> to vector<4x8x8xbf16>
    %c0_4 = arith.constant 0 : index
    %c0_5 = arith.constant 0 : index
    %c0_6 = arith.constant 0 : index
    %c0_7 = arith.constant 0 : index
    %5 = vector.load %arg4[%c0_4, %c0_5, %c0_6, %c0_7] : memref<1x4x8x8xbf16, #tpu.memory_space<vmem>>, vector<1x4x8x8xbf16>
    %6 = vector.shape_cast %5 : vector<1x4x8x8xbf16> to vector<4x8x8xbf16>
    %c0_8 = arith.constant 0 : index
    %c0_9 = arith.constant 0 : index
    %c0_10 = arith.constant 0 : index
    %c0_11 = arith.constant 0 : index
    %7 = vector.load %arg5[%c0_8, %c0_9, %c0_10, %c0_11] : memref<1x4x8x8xbf16, #tpu.memory_space<vmem>>, vector<1x4x8x8xbf16>
    %8 = vector.shape_cast %7 : vector<1x4x8x8xbf16> to vector<4x8x8xbf16>
    "tpu.trace_start"() <{level = 10 : i32, message = "hqd,hdk->hqk"}> : () -> ()
    %cst = arith.constant dense<0.000000e+00> : vector<4x8x8xf32>
    %9 = tpu.matmul %4, %6, %cst {dimension_numbers = #tpu.dot_dimension_numbers<[2], [1], [1], [2], [0, 0, 0, 1, 1, 2], [0], [0]>} : vector<4x8x8xbf16>, vector<4x8x8xbf16>, vector<4x8x8xf32> -> vector<4x8x8xf32>
    "tpu.trace_stop"() : () -> ()
    %c0_12 = arith.constant 0 : index
    %c0_13 = arith.constant 0 : index
    %c0_14 = arith.constant 0 : index
    %10 = vector.load %arg7[%c0_12, %c0_13, %c0_14] : memref<4x8x1xf32, #tpu.memory_space<vmem>>, vector<4x8x1xf32>
    %cst_15 = arith.constant dense<0xFF800000> : vector<4x8xf32>
    %11 = vector.multi_reduction <maximumf>, %9, %cst_15 [2] : vector<4x8x8xf32> to vector<4x8xf32>
    %12 = vector.shape_cast %11 : vector<4x8xf32> to vector<4x8x1xf32>
    %13 = arith.maximumf %10, %12 : vector<4x8x1xf32>
    %14 = arith.subf %10, %13 : vector<4x8x1xf32>
    %15 = math.exp %14 : vector<4x8x1xf32>
    %16 = vector.broadcast %13 : vector<4x8x1xf32> to vector<4x8x8xf32>
    %17 = arith.subf %9, %16 : vector<4x8x8xf32>
    %18 = math.exp %17 : vector<4x8x8xf32>
    %cst_16 = arith.constant dense<0.000000e+00> : vector<4x8xf32>
    %19 = vector.multi_reduction <add>, %18, %cst_16 [2] : vector<4x8x8xf32> to vector<4x8xf32>
    %20 = vector.shape_cast %19 : vector<4x8xf32> to vector<4x8x1xf32>
    %21 = arith.truncf %18 : vector<4x8x8xf32> to vector<4x8x8xbf16>
    %c0_17 = arith.constant 0 : index
    %c0_18 = arith.constant 0 : index
    %c0_19 = arith.constant 0 : index
    %22 = vector.load %arg8[%c0_17, %c0_18, %c0_19] : memref<4x8x1xf32, #tpu.memory_space<vmem>>, vector<4x8x1xf32>
    %23 = arith.mulf %15, %22 : vector<4x8x1xf32>
    %24 = arith.addf %23, %20 : vector<4x8x1xf32>
    %c0_20 = arith.constant 0 : index
    %c0_21 = arith.constant 0 : index
    %c0_22 = arith.constant 0 : index
    %25 = vector.load %arg8[%c0_20, %c0_21, %c0_22] : memref<4x8x1xf32, #tpu.memory_space<vmem>>, vector<4x8x1xf32>
    tpu.vector_store %arg8[%c0_20, %c0_21, %c0_22], %24 {strides = array<i32>} : memref<4x8x1xf32, #tpu.memory_space<vmem>>, vector<4x8x1xf32>,
    %c0_23 = arith.constant 0 : index
    %c0_24 = arith.constant 0 : index
    %c0_25 = arith.constant 0 : index
    %26 = vector.load %arg9[%c0_23, %c0_24, %c0_25] : memref<4x8x8xf32, #tpu.memory_space<vmem>>, vector<4x8x8xf32>
    %27 = vector.broadcast %15 : vector<4x8x1xf32> to vector<4x8x8xf32>
    %28 = arith.mulf %27, %26 : vector<4x8x8xf32>
    "tpu.trace_start"() <{level = 10 : i32, message = "hqk,hkd->hqd"}> : () -> ()
    %cst_26 = arith.constant dense<0.000000e+00> : vector<4x8x8xf32>
    %29 = tpu.matmul %21, %8, %cst_26 {dimension_numbers = #tpu.dot_dimension_numbers<[2], [1], [1], [2], [0, 0, 0, 1, 1, 2], [0], [0]>} : vector<4x8x8xbf16>, vector<4x8x8xbf16>, vector<4x8x8xf32> -> vector<4x8x8xf32>
    "tpu.trace_stop"() : () -> ()
    %30 = arith.addf %28, %29 : vector<4x8x8xf32>
    %c0_27 = arith.constant 0 : index
    %c0_28 = arith.constant 0 : index
    %c0_29 = arith.constant 0 : index
    %31 = vector.load %arg9[%c0_27, %c0_28, %c0_29] : memref<4x8x8xf32, #tpu.memory_space<vmem>>, vector<4x8x8xf32>
    tpu.vector_store %arg9[%c0_27, %c0_28, %c0_29], %30 {strides = array<i32>} : memref<4x8x8xf32, #tpu.memory_space<vmem>>, vector<4x8x8xf32>,
    %c0_30 = arith.constant 0 : index
    %c0_31 = arith.constant 0 : index
    %c0_32 = arith.constant 0 : index
    %32 = vector.load %arg7[%c0_30, %c0_31, %c0_32] : memref<4x8x1xf32, #tpu.memory_space<vmem>>, vector<4x8x1xf32>
    tpu.vector_store %arg7[%c0_30, %c0_31, %c0_32], %13 {strides = array<i32>} : memref<4x8x1xf32, #tpu.memory_space<vmem>>, vector<4x8x1xf32>,
    %c0_i32_33 = arith.constant 0 : i32
    %33 = arith.cmpi eq, %arg2, %c0_i32_33 : i32
    %34 = arith.extui %33 : i1 to i32
    %c0_i32_34 = arith.constant 0 : i32
    %35 = arith.cmpi ne, %34, %c0_i32_34 : i32
    scf.if %35 {
      %c0_35 = arith.constant 0 : index
      %c0_36 = arith.constant 0 : index
      %c0_37 = arith.constant 0 : index
      %36 = vector.load %arg8[%c0_35, %c0_36, %c0_37] : memref<4x8x1xf32, #tpu.memory_space<vmem>>, vector<4x8x1xf32>
      %37 = tpu.reciprocal %36 {approx = true} : vector<4x8x1xf32> -> vector<4x8x1xf32>
      %c0_38 = arith.constant 0 : index
      %c0_39 = arith.constant 0 : index
      %c0_40 = arith.constant 0 : index
      %38 = vector.load %arg9[%c0_38, %c0_39, %c0_40] : memref<4x8x8xf32, #tpu.memory_space<vmem>>, vector<4x8x8xf32>
      %39 = vector.broadcast %37 : vector<4x8x1xf32> to vector<4x8x8xf32>
      %40 = arith.mulf %38, %39 : vector<4x8x8xf32>
      %41 = arith.truncf %40 : vector<4x8x8xf32> to vector<4x8x8xbf16>
      %c0_41 = arith.constant 0 : index
      %c0_42 = arith.constant 0 : index
      %c0_43 = arith.constant 0 : index
      %c0_44 = arith.constant 0 : index
      %42 = vector.load %arg6[%c0_41, %c0_42, %c0_43, %c0_44] : memref<1x4x8x8xbf16, #tpu.memory_space<vmem>>, vector<1x4x8x8xbf16>
      %43 = vector.shape_cast %42 : vector<1x4x8x8xbf16> to vector<4x8x8xbf16>
      %44 = vector.shape_cast %41 : vector<4x8x8xbf16> to vector<1x4x8x8xbf16>
      tpu.vector_store %arg6[%c0_41, %c0_42, %c0_43, %c0_44], %44 {strides = array<i32>} : memref<1x4x8x8xbf16, #tpu.memory_space<vmem>>, vector<1x4x8x8xbf16>,
    } else {
    }
    return
  }
  func.func @transform_0(%arg0: i32, %arg1: i32, %arg2: i32) -> (i32, i32, i32, i32) {
    %c0_i32 = arith.constant 0 : i32
    %c0_i32_0 = arith.constant 0 : i32
    %c0_i32_1 = arith.constant 0 : i32
    return %arg0, %c0_i32, %arg1, %c0_i32_0 : i32, i32, i32, i32
  }
  func.func @transform_1(%arg0: i32, %arg1: i32, %arg2: i32) -> (i32, i32, i32, i32) {
    %c0_i32 = arith.constant 0 : i32
    %c0_i32_0 = arith.constant 0 : i32
    %c0_i32_1 = arith.constant 0 : i32
    return %arg0, %c0_i32, %c0_i32_0, %arg2 : i32, i32, i32, i32
  }
  func.func @transform_2(%arg0: i32, %arg1: i32, %arg2: i32) -> (i32, i32, i32, i32) {
    %c0_i32 = arith.constant 0 : i32
    %c0_i32_0 = arith.constant 0 : i32
    %c0_i32_1 = arith.constant 0 : i32
    return %arg0, %c0_i32, %arg2, %c0_i32_0 : i32, i32, i32, i32
  }
  func.func @transform_3(%arg0: i32, %arg1: i32, %arg2: i32) -> (i32, i32, i32, i32) {
    %c0_i32 = arith.constant 0 : i32
    %c0_i32_0 = arith.constant 0 : i32
    %c0_i32_1 = arith.constant 0 : i32
    return %arg0, %c0_i32, %arg1, %c0_i32_0 : i32, i32, i32, i32
  }
}

</mosaic_0001>

<bundles_post_ra>
// kernel: tattention_forward.5
= control target key start
LH: loop header
LB: loop body
LE: loop exit
PB: predicated region body
PF: predicated region fallthrough
CT: control target
= control target key end

     0   :  { %vm39_vm0 = vcmask 261120   ;;  %s362_s0 = inlined_call_operand.vmem [shape: f32[16,32], index: 0, kind: input, shape index: {}]   ;;  %s363_s1 = inlined_call_operand.vmem [shape: bf16[16,32], index: 1, kind: input, shape index: {}]   ;;  %s364_s2 = inlined_call_operand.vmem [shape: f32[1,32], index: 2, kind: input, shape index: {}]   ;;  %s365_s3 = inlined_call_operand.vmem [shape: f32[1,32], index: 3, kind: input, shape index: {}]   ;;  %s366_s4 = inlined_call_operand.vmem [shape: bf16[32,32], index: 4, kind: input, shape index: {}]   ;;  %s367_s5 = inlined_call_operand.vmem [shape: f32[1,32], index: 5, kind: input, shape index: {}]   ;;  %s368_s6 = inlined_call_operand.vmem [shape: bf16[32,32], index: 6, kind: input, shape index: {}]   ;;  %s369_s7 = inlined_call_operand.vmem [shape: f32[1,32], index: 7, kind: input, shape index: {}]   ;;  %s370_s8 = inlined_call_operand.hbm [shape: f32[16,32], index: 8, kind: output, shape index: {}]  }
   0x1   :  { %v31_v0 = vld [vmem:[%s362_s0] sm:$0xff] }
   0x2   :  { %v226_v1 = vld [vmem:[%s363_s1] sm:$0xff]  }
   0x3   :  { %v227_v2 = vunpack.c.l.bf16 %v226_v1 }
   0x4   :  { %13 = vsyncpa [#allocation3], 0  ;;  %v228_v4 = vunpack.c.h.bf16 %v226_v1  ;;  %v32_v5 = vld [vmem:[%s362_s0 + $0x8] sm:$0xff]  ;;  %v269_v9 = vmov 32.0   ;;  %v221_v28 = vld [vmem:[%s366_s4] sm:$0xff]  ;;  %s191_s24 = sshll.u32 %s370_s8, 4  ;;  %s192_s24 = int_to_ptr.hbm [resolvable:$true] %s191_s24 }
   0x5   :  { %v37_v3 = vadd.f32 %v227_v2, %v31_v0  ;;  %237 = vrcp.f32 %v269_v9  ;;  %v222_v26 = vld [vmem:[%s366_s4 + $0x8] sm:$0xff]  ;;  %v233_v47 = vld [vmem:[%s364_s2] ss:$0 sm:$0xff]  ;;  %s271_s25 = smov 128  }
   0x6   :  { %v38_v7 = vadd.f32 %v228_v4, %v32_v5  ;;  %133 = vmatpush.bf16.msra.mxu0 %v222_v26  ;;  %v234_v52 = vld [vmem:[%s365_s3] ss:$0 sm:$0xff]  ;;  %v224_v57 = vld [vmem:[%s368_s6 + $0x8] sm:$0xff] }
   0x7   :  { %v40_v6 = vsel %vm39_vm0, %v37_v3, 0.0  ;;  %173 = vmatpush.bf16.msra.mxu1 %v224_v57  ;;  %v223_v58 = vld [vmem:[%s368_s6] sm:$0xff]  ;;  %s270_s6 = smov [#allocation2]  }
   0x8   :  { %41 = vadd.xlane.f32.xlu0 %v40_v6  ;;  %v43_v8 = vsel %vm39_vm0, %v38_v7, 0.0  ;;  %v235_v60 = vld [vmem:[%s367_s5] ss:$0 sm:$0xff]  ;;  %s189_s22 = sshll.u32 %s270_s6, 4  ;;  %s190_s22 = int_to_ptr.vmem [resolvable:$true] %s189_s22 }
   0xa   :  { %134 = vmatpush.bf16.msra.mxu0 %v221_v28 }
   0xb   :  { %v238_v10 = vpop.eup %237  ;;  %174 = vmatpush.bf16.msra.mxu1 %v223_v58 }
   0xc   :  { %v47_v11 = vmul.f32 32.0, %v238_v10  ;;  %vm51_vm1 = vweird.f32 %v238_v10 }
   0xe   :  { %v48_v12 = vsub.f32 1.0, %v47_v11 }
  0x10   :  { %44 = vadd.xlane.f32.xlu0 %v43_v8  ;;  %v49_v13 = vmul.f32 %v238_v10, %v48_v12 }
  0x12   :  { %v50_v14 = vadd.f32 %v238_v10, %v49_v13 }
  0x14   :  { %v52_v15 = vsel %vm51_vm1, %v238_v10, %v50_v14 }
  0x7b   :  { %v42_v16 = vpop.xlane.xlu0 %41 }
  0x7c   :  { %v53_v17 = vmul.f32 %v52_v15, %v42_v16 }
  0x7e   :  { %v55_v18 = vsub.f32 %v37_v3, %v53_v17  ;;  %v236_v3 = vld [vmem:[%s369_s7] ss:$0 sm:$0xff]  ;;  %s272_s7 = smov 8  }
  0x80   :  { %v57_v19 = vmul.f32 %v55_v18, %v55_v18 }
  0x82   :  { %v59_v20 = vsel %vm39_vm0, %v57_v19, 0.0 }
  0x83   :  { %60 = vadd.xlane.f32.xlu1 %v59_v20  ;;  %v45_v21 = vpop.xlane.xlu0 %44 }
  0x84   :  { %v54_v22 = vmul.f32 %v52_v15, %v45_v21 }
  0x86   :  { %v56_v23 = vsub.f32 %v38_v7, %v54_v22 }
  0x88   :  { %v58_v24 = vmul.f32 %v56_v23, %v56_v23 }
  0x8a   :  { %v62_v25 = vsel %vm39_vm0, %v58_v24, 0.0 }
  0x8b   :  { %63 = vadd.xlane.f32.xlu1 %v62_v25 }
  0xf6   :  { %v61_v27 = vpop.xlane.xlu1 %60 }
  0xf7   :  { %v65_v29 = vmul.f32 %v61_v27, %v52_v15 }
  0xf9   :  { %v67_v30 = vadd.f32 1e-05, %v65_v29 }
  0xfb   :  { %239 = vrsqrt.f32 %v67_v30  ;;  %vm75_vm3 = vweird.f32 %v67_v30 }
  0xfe   :  { %v64_v31 = vpop.xlane.xlu1 %63 }
  0xff   :  { %v66_v32 = vmul.f32 %v64_v31, %v52_v15 }
 0x101   :  { %v240_v33 = vpop.eup %239  ;;  %v68_v34 = vadd.f32 1e-05, %v66_v32 }
 0x102   :  { %v70_v35 = vmul.f32 %v240_v33, %v67_v30  ;;  %vm76_vm2 = vweird.f32 %v240_v33 }
 0x103   :  { %241 = vrsqrt.f32 %v68_v34  ;;  %vm77_vm4 = vmor %vm75_vm3, %vm76_vm2  ;;  %vm85_vm6 = vweird.f32 %v68_v34 }
 0x104   :  { %v71_v36 = vmul.f32 %v240_v33, %v70_v35 }
 0x106   :  { %v72_v37 = vmul.f32 0.5, %v71_v36 }
 0x108   :  { %v73_v38 = vsub.f32 1.5, %v72_v37 }
 0x109   :  { %v242_v39 = vpop.eup %241 }
 0x10a   :  { %v74_v40 = vmul.f32 %v240_v33, %v73_v38  ;;  %v80_v41 = vmul.f32 %v242_v39, %v68_v34  ;;  %vm86_vm5 = vweird.f32 %v242_v39 }
 0x10b   :  { %vm87_vm7 = vmor %vm85_vm6, %vm86_vm5 }
 0x10c   :  { %v81_v42 = vmul.f32 %v242_v39, %v80_v41  ;;  %v78_v43 = vsel %vm77_vm4, %v240_v33, %v74_v40 }
 0x10d   :  { %v89_v46 = vmul.f32 %v78_v43, %v55_v18 }
 0x10e   :  { %v82_v44 = vmul.f32 0.5, %v81_v42 }
 0x10f   :  { %v95_v51 = vmul.f32 %v233_v47, %v89_v46 }
 0x110   :  { %v83_v45 = vsub.f32 1.5, %v82_v44 }
 0x111   :  { %v101_v54 = vadd.f32 %v234_v52, %v95_v51 }
 0x112   :  { %v84_v48 = vmul.f32 %v242_v39, %v83_v45 }
 0x114   :  { %v88_v49 = vsel %vm87_vm7, %v242_v39, %v84_v48 }
 0x115   :  { %v90_v50 = vmul.f32 %v88_v49, %v56_v23 }
 0x117   :  { %v96_v53 = vmul.f32 %v233_v47, %v90_v50 }
 0x119   :  { %v102_v55 = vadd.f32 %v234_v52, %v96_v53 }
 0x11b   :  { %v103_v56 = vpack.c.bf16 %v102_v55, %v101_v54 }
 0x11d   :  { %211 = vmatmul.msk.bf16.vlgmr.msra.gmra.mxu0 %vm39_vm0, %v103_v56 }
 0x19a   :  { %v136_v59 = vpop.f32.mrf.mxu0 }
 0x19b   :  { %v137_v61 = vadd.f32 %v235_v60, %v136_v59 }
 0x19d   :  { %v141_v0 = vmax.f32 %v137_v61, 0.0 }
 0x1a2   :  { %v138_v62 = vpop.f32.mrf.mxu0 }
 0x1a3   :  { %v139_v63 = vadd.f32 %v235_v60, %v138_v62 }
 0x1a5   :  { %v142_v1 = vmax.f32 %v139_v63, 0.0 }
 0x1a7   :  { %v143_v2 = vpack.c.bf16 %v142_v1, %v141_v0 }
 0x1a9   :  { %220 = vmatmul.msk.bf16.vlgmr.msra.gmra.mxu1 %vm39_vm0, %v143_v2 }
 0x226   :  { %v176_v4 = vpop.f32.mrf.mxu1 }
 0x227   :  { %v177_v5 = vadd.f32 %v236_v3, %v176_v4 }
 0x229   :  { %v181_v6 = vadd.f32 %v177_v5, %v101_v54 }
 0x22b   :  { %183 = vst.msk [vmem:[#allocation2] sm:$0xff] %vm39_vm0, %v181_v6 }
 0x22e   :  { %v178_v7 = vpop.f32.mrf.mxu1 }
 0x22f   :  { %v179_v8 = vadd.f32 %v236_v3, %v178_v7 }
 0x231   :  { %v182_v9 = vadd.f32 %v179_v8, %v102_v55 }
 0x233   :  { %184 = vst.msk [vmem:[#allocation2 + $0x8] sm:$0xff] %vm39_vm0, %v182_v9 }
 0x234   :  { %197 = dma.vmem_to_hbm [thread:$0]  %s190_s22, 256, %s192_s24, [#allocation3], %s271_s25, %s271_s25, %s272_s7  }
 0x235   :  { %267 = dma.done.wait [#allocation3], 256  }
 0x236   :  { %268 = vsyncadd [#allocation3], 4294967040 }
 0x237   :  { %202 = vsyncpa [#allocation3], 1 }

// kernel: tattention_forward.3
= control target key start
LH: loop header
LB: loop body
LE: loop exit
PB: predicated region body
PF: predicated region fallthrough
CT: control target
= control target key end

     0   :  { %vm22_vm0 = vcmask 261120   ;;  %v155_v4 = vmov 32.0   ;;  %vm124_vm8 = vcmask 781312   ;;  %s223_s0 = inlined_call_operand.vmem [shape: f32[16,32], index: 0, kind: input, shape index: {}]   ;;  %s224_s1 = inlined_call_operand.vmem [shape: f32[1,32], index: 1, kind: input, shape index: {}]   ;;  %s225_s2 = inlined_call_operand.vmem [shape: f32[1,32], index: 2, kind: input, shape index: {}]   ;;  %s226_s3 = inlined_call_operand.vmem [shape: bf16[32,96], index: 3, kind: input, shape index: {}]   ;;  %s227_s4 = inlined_call_operand.vmem [shape: f32[16,32], index: 4, kind: output, shape index: {0}]   ;;  %s228_s5 = inlined_call_operand.vmem [shape: bf16[16,96], index: 5, kind: output, shape index: {1}]  }
   0x1   :  { %v20_v0 = vld [vmem:[%s223_s0] sm:$0xff]  ;;  %v21_v2 = vld [vmem:[%s223_s0 + $0x8] sm:$0xff]  ;;  %149 = vrcp.f32 %v155_v4 }
   0x2   :  { %v23_v1 = vsel %vm22_vm0, %v20_v0, 0.0  ;;  %v26_v3 = vsel %vm22_vm0, %v21_v2, 0.0  ;;  %v145_v21 = vld [vmem:[%s226_s3 + $0x8] sm:$0xff]  ;;  %v144_v23 = vld [vmem:[%s226_s3] sm:$0xff] }
   0x3   :  { %24 = vadd.xlane.f32.xlu0 %v23_v1  ;;  %114 = vmatpush.bf16.msra.mxu0 %v145_v21  ;;  %v147_v37 = vld [vmem:[%s224_s1] ss:$0 sm:$0xff] }
   0x4   :  { %v148_v41 = vld [vmem:[%s225_s2] ss:$0 sm:$0xff] }
   0x7   :  { %v150_v5 = vpop.eup %149  ;;  %115 = vmatpush.bf16.msra.mxu0 %v144_v23 }
   0x8   :  { %v30_v6 = vmul.f32 32.0, %v150_v5  ;;  %vm34_vm1 = vweird.f32 %v150_v5 }
   0xa   :  { %v31_v7 = vsub.f32 1.0, %v30_v6 }
   0xb   :  { %27 = vadd.xlane.f32.xlu0 %v26_v3 }
   0xc   :  { %v32_v8 = vmul.f32 %v150_v5, %v31_v7 }
   0xe   :  { %v33_v9 = vadd.f32 %v150_v5, %v32_v8 }
  0x10   :  { %v35_v10 = vsel %vm34_vm1, %v150_v5, %v33_v9 }
  0x76   :  { %v25_v11 = vpop.xlane.xlu0 %24 }
  0x77   :  { %v36_v12 = vmul.f32 %v35_v10, %v25_v11 }
  0x79   :  { %v38_v13 = vsub.f32 %v20_v0, %v36_v12 }
  0x7b   :  { %v40_v14 = vmul.f32 %v38_v13, %v38_v13 }
  0x7d   :  { %v42_v15 = vsel %vm22_vm0, %v40_v14, 0.0 }
  0x7e   :  { %43 = vadd.xlane.f32.xlu1 %v42_v15  ;;  %v28_v16 = vpop.xlane.xlu0 %27 }
  0x7f   :  { %v37_v17 = vmul.f32 %v35_v10, %v28_v16 }
  0x81   :  { %v39_v18 = vsub.f32 %v21_v2, %v37_v17 }
  0x83   :  { %v41_v19 = vmul.f32 %v39_v18, %v39_v18 }
  0x85   :  { %v45_v20 = vsel %vm22_vm0, %v41_v19, 0.0 }
  0x86   :  { %46 = vadd.xlane.f32.xlu1 %v45_v20 }
  0xf1   :  { %v44_v22 = vpop.xlane.xlu1 %43 }
  0xf2   :  { %v48_v24 = vmul.f32 %v44_v22, %v35_v10 }
  0xf4   :  { %v50_v25 = vadd.f32 1e-05, %v48_v24 }
  0xf6   :  { %151 = vrsqrt.f32 %v50_v25  ;;  %vm58_vm3 = vweird.f32 %v50_v25 }
  0xf9   :  { %v47_v26 = vpop.xlane.xlu1 %46 }
  0xfa   :  { %v49_v27 = vmul.f32 %v47_v26, %v35_v10 }
  0xfc   :  { %v152_v28 = vpop.eup %151  ;;  %v51_v29 = vadd.f32 1e-05, %v49_v27 }
  0xfd   :  { %v53_v30 = vmul.f32 %v152_v28, %v50_v25  ;;  %vm59_vm2 = vweird.f32 %v152_v28 }
  0xfe   :  { %153 = vrsqrt.f32 %v51_v29  ;;  %vm60_vm4 = vmor %vm58_vm3, %vm59_vm2  ;;  %vm68_vm6 = vweird.f32 %v51_v29 }
  0xff   :  { %v54_v31 = vmul.f32 %v152_v28, %v53_v30 }
 0x101   :  { %v55_v32 = vmul.f32 0.5, %v54_v31 }
 0x103   :  { %v56_v33 = vsub.f32 1.5, %v55_v32 }
 0x104   :  { %v154_v34 = vpop.eup %153 }
 0x105   :  { %v57_v35 = vmul.f32 %v152_v28, %v56_v33  ;;  %v63_v36 = vmul.f32 %v154_v34, %v51_v29  ;;  %vm69_vm5 = vweird.f32 %v154_v34 }
 0x106   :  { %vm70_vm7 = vmor %vm68_vm6, %vm69_vm5 }
 0x107   :  { %v61_v38 = vsel %vm60_vm4, %v152_v28, %v57_v35  ;;  %v64_v39 = vmul.f32 %v154_v34, %v63_v36 }
 0x108   :  { %v72_v40 = vmul.f32 %v61_v38, %v38_v13 }
 0x109   :  { %v65_v42 = vmul.f32 0.5, %v64_v39 }
 0x10a   :  { %v78_v43 = vmul.f32 %v147_v37, %v72_v40 }
 0x10b   :  { %v66_v44 = vsub.f32 1.5, %v65_v42 }
 0x10c   :  { %v84_v45 = vadd.f32 %v148_v41, %v78_v43 }
 0x10d   :  { %v67_v46 = vmul.f32 %v154_v34, %v66_v44 }
 0x10e   :  { %86 = vst.msk [vmem:[%s227_s4] sm:$0xff] %vm22_vm0, %v84_v45 }
 0x10f   :  { %v71_v47 = vsel %vm70_vm7, %v154_v34, %v67_v46 }
 0x110   :  { %v73_v48 = vmul.f32 %v71_v47, %v39_v18 }
 0x112   :  { %v79_v49 = vmul.f32 %v147_v37, %v73_v48 }
 0x114   :  { %v85_v50 = vadd.f32 %v148_v41, %v79_v49 }
 0x116   :  { %87 = vst.msk [vmem:[%s227_s4 + $0x8] sm:$0xff] %vm22_vm0, %v85_v50  ;;  %v88_v51 = vpack.c.bf16 %v85_v50, %v84_v45 }
 0x118   :  { %143 = vmatmul.msk.bf16.vlgmr.msra.gmra.mxu0 %vm22_vm0, %v88_v51 }
 0x195   :  { %v117_v52 = vpop.f32.mrf.mxu0 }
 0x196   :  { %v122_v53 = vpack.c.bf16 %v117_v52, %v117_v52 }
 0x198   :  { %125 = vst.msk [vmem:[%s228_s5] sm:$0xf] %vm124_vm8, %v122_v53 }
 0x19d   :  { %v119_v54 = vpop.f32.mrf.mxu0 }
 0x19e   :  { %v123_v55 = vpack.c.bf16 %v119_v54, %v119_v54 }
 0x1a0   :  { %126 = vst.msk [vmem:[%s228_s5 + $0x4] sm:$0xf] %vm124_vm8, %v123_v55 }

// kernel: tattention_forward.4
= control target key start
LH: loop header
LB: loop body
LE: loop exit
PB: predicated region body
PF: predicated region fallthrough
CT: control target
= control target key end

     0   :  { %s891_s12 = smov 0   ;;  %s893_s13 = smov 0   ;;  %s1041_s0 = inlined_call_operand.vmem [shape: bf16[2,4,8,8], index: 0, kind: input, shape index: {}]   ;;  %s1042_s1 = inlined_call_operand.vmem [shape: bf16[2,4,8,8], index: 1, kind: input, shape index: {}]   ;;  %s1043_s2 = inlined_call_operand.vmem [shape: bf16[2,4,8,8], index: 2, kind: input, shape index: {}]   ;;  %s1044_s3 = inlined_call_operand.vmem [shape: bf16[2,4,8,8], index: 3, kind: output, shape index: {}]  }
   0x1   :  { %s895_s14 = smov 0  }
   0x2 LB: > { %s32_s15 = sadd.s32 1, %s862_s13  ;;  %p767_p0 = scmp.ge.s32.totalorder %s866_s14, 1  ;;  %s866_s14 = sphi %s895_s14, %s13_s14   ;;  %s862_s13 = sphi %s893_s13, %s1046_s13   ;;  %s858_s12 = sphi %s891_s12, %s1045_s12  }
   0x3   : > { %p34_p1 = scmp.ge.s32.totalorder %s32_s15, 2  ;;  %p193_p2 = scmp.lt.s32.totalorder %s866_s14, 3 }
   0x5   : > { %s1048_s15 = smov (%p34_p1, %s32_s15), 0  ;;  %p194_p3 = pnand %p767_p0, %p193_p2 }
   0x6   : > { %p239_p4 = scmp.lt.s32.totalorder (!%p194_p3), %s858_s12, 1 }
   0x7   : > { %197 = sbr.rel (%p194_p3) target bundleno = 694 (0x2b6), region = 32 }
   0xc   : > { %s1050_s12 = smov (!%p239_p4, %s858_s12), 1  ;;  %vm306_vm0 = vcmask 1043456   ;;  %vm285_vm1 = vcmask 64512   ;;  %vm276_vm2 = vcmask 7168   ;;  %v868_v12 = vmov -inf  }
   0xd   : > { %s909_s16 = sshll.u32 %s1050_s12, 4  ;;  %277 = vst.msk [vmem:[#allocation2] sm:$0xff] %vm276_vm2, %v868_v12  ;;  %v869_v25 = vmov 0   ;;  %v870_v26 = vmov 0.0   ;;  %vm636_vm3 = vcmask 60416  }
   0xe   : > { %s254_s19 = scalar_lea.vmem %s1042_s1, %s909_s16  ;;  %s246_s22 = scalar_lea.vmem %s1041_s0, %s909_s16  ;;  %278 = vst.msk [vmem:[#allocation2 + $0x8] sm:$0xff] %vm276_vm2, %v868_v12  ;;  %818 = vset.pattern.permute.xlu0 %v869_v25  ;;  %817 = vset.pattern.permute.xlu2 %v869_v25 }
   0xf   : > { %v294_v0 = vld [vmem:[%s254_s19] sm:$0xf]  ;;  %v296_v1 = vld [vmem:[%s254_s19 + $0x8] sm:$0xf]  ;;  %v295_v5 = vld [vmem:[%s254_s19 + $0x4] sm:$0xf]  ;;  %819 = vset.pattern.permute.xlu1 %v869_v25  ;;  %s262_s25 = scalar_lea.vmem %s1043_s2, %s909_s16  ;;  %s270_s28 = scalar_lea.vmem %s1044_s3, %s909_s16 }
  0x10   : > { %v308_v2 = vsel %vm306_vm0, %v294_v0, 0  ;;  %v346_v3 = vsel %vm306_vm0, %v296_v1, 0  ;;  %v290_v4 = vld [vmem:[%s246_s22] sm:$0xf]  ;;  %v292_v6 = vld [vmem:[%s246_s22 + $0x8] sm:$0xf] }
  0x11   : > { %317 = vmatpush.bf16.msra.mxu0 %v308_v2  ;;  %355 = vmatpush.bf16.msra.mxu2 %v346_v3  ;;  %v327_v7 = vsel %vm306_vm0, %v295_v5, 0  ;;  %v297_v8 = vld [vmem:[%s254_s19 + $0xc] sm:$0xf]  ;;  %v291_v10 = vld [vmem:[%s246_s22 + $0x4] sm:$0xf]  ;;  %279 = vst.msk [vmem:[#allocation2 + $0x10] sm:$0xff] %vm276_vm2, %v868_v12 }
  0x12   : > { %336 = vmatpush.bf16.msra.mxu1 %v327_v7  ;;  %v365_v9 = vsel %vm306_vm0, %v297_v8, 0  ;;  %v293_v11 = vld [vmem:[%s246_s22 + $0xc] sm:$0xf]  ;;  %280 = vst.msk [vmem:[#allocation2 + $0x18] sm:$0xff] %vm276_vm2, %v868_v12  ;;  %v300_v43 = vld [vmem:[%s262_s25 + $0x8] sm:$0xf] }
  0x13   : > { %374 = vmatpush.bf16.msra.mxu3 %v365_v9  ;;  %283 = vst.msk [vmem:[#allocation3 + $0x10] sm:$0xff] %vm276_vm2, %v870_v26  ;;  %v547_v44 = vsel %vm306_vm0, %v300_v43, 0  ;;  %v301_v45 = vld [vmem:[%s262_s25 + $0xc] sm:$0xf]  ;;  %v298_v47 = vld [vmem:[%s262_s25] sm:$0xf] }
  0x14   : > { %776 = vmatmul.msk.bf16.vlgmr.msra.gmra.mxu0 %vm285_vm1, %v290_v4  ;;  %778 = vmatmul.msk.bf16.vlgmr.msra.gmra.mxu2 %vm285_vm1, %v292_v6  ;;  %281 = vst.msk [vmem:[#allocation3] sm:$0xff] %vm276_vm2, %v870_v26  ;;  %v955_v27 = vld [vmem:[#allocation2] sm:$0xff]  ;;  %v566_v46 = vsel %vm306_vm0, %v301_v45, 0  ;;  %v509_v48 = vsel %vm306_vm0, %v298_v47, 0 }
  0x15   : > { %777 = vmatmul.msk.bf16.vlgmr.msra.gmra.mxu1 %vm285_vm1, %v291_v10  ;;  %282 = vst.msk [vmem:[#allocation3 + $0x8] sm:$0xff] %vm276_vm2, %v870_v26  ;;  %v967_v33 = vld [vmem:[#allocation2 + $0x8] sm:$0xff]  ;;  %556 = vmatpush.bf16.msrb.mxu2 %v547_v44  ;;  %v299_v50 = vld [vmem:[%s262_s25 + $0x4] sm:$0xf] }
  0x16   : > { %779 = vmatmul.msk.bf16.vlgmr.msra.gmra.mxu3 %vm285_vm1, %v293_v11  ;;  %284 = vst.msk [vmem:[#allocation3 + $0x18] sm:$0xff] %vm276_vm2, %v870_v26  ;;  %518 = vmatpush.bf16.msrb.mxu0 %v509_v48  ;;  %v528_v52 = vsel %vm306_vm0, %v299_v50, 0 }
  0x17   : > { %286 = vst.msk [vmem:[#allocation4] sm:$0xff] %vm285_vm1, %v870_v26  ;;  %575 = vmatpush.bf16.msrb.mxu3 %v566_v46  ;;  %537 = vmatpush.bf16.msrb.mxu1 %v528_v52 }
  0x18   : > { %287 = vst.msk [vmem:[#allocation4 + $0x8] sm:$0xff] %vm285_vm1, %v870_v26  ;;  %v965_v31 = vld [vmem:[#allocation2 + $0x10] sm:$0xff] }
  0x19   : > { %288 = vst.msk [vmem:[#allocation4 + $0x10] sm:$0xff] %vm285_vm1, %v870_v26  ;;  %v980_v39 = vld [vmem:[#allocation2 + $0x18] sm:$0xff] }
  0x1a   : > { %289 = vst.msk [vmem:[#allocation4 + $0x18] sm:$0xff] %vm285_vm1, %v870_v26 }
  0x91   : > { %v931_v13 = vpop.f32.mrf.mxu0 }
  0x92   : > { %v384_v14 = vsel %vm285_vm1, %v931_v13, -inf  ;;  %v935_v15 = vpop.f32.mrf.mxu1 }
  0x93   : > { %385 = vmax.xlane.f32.xlu1 %v384_v14  ;;  %v387_v18 = vsel %vm285_vm1, %v935_v15, -inf }
  0x97   : > { %v937_v16 = vpop.f32.mrf.mxu2 }
  0x98   : > { %v390_v17 = vsel %vm285_vm1, %v937_v16, -inf }
  0x99   : > { %391 = vmax.xlane.f32.xlu0 %v390_v17  ;;  %v321_v19 = vpop.f32.mrf.mxu0  ;;  %v943_v20 = vpop.f32.mrf.mxu3 }
  0x9a   : > { %v340_v21 = vpop.f32.mrf.mxu1  ;;  %v393_v22 = vsel %vm285_vm1, %v943_v20, -inf }
  0x9b   : > { %388 = vmax.xlane.f32.xlu1 %v387_v18  ;;  %v462_v18 = vld [vmem:[#allocation3 + $0x10] sm:$0xff] }
  0x9f   : > { %v359_v23 = vpop.f32.mrf.mxu2 }
  0xa1   : > { %394 = vmax.xlane.f32.xlu0 %v393_v22  ;;  %v378_v24 = vpop.f32.mrf.mxu3 }
  0xa2   : > { %v460_v24 = vld [vmem:[#allocation3] sm:$0xff] }
 0x106   : > { %v386_v28 = vpop.xlane.xlu1 %385 }
 0x107   : > { %v958_v29 = vmax.f32 %v955_v27, %v386_v28 }
 0x109   : > { %v400_v30 = vsub.f32 %v955_v27, %v958_v29  ;;  %589 = vst.msk [vmem:[#allocation2] sm:$0xff] %vm276_vm2, %v958_v29  ;;  %414 = vperm.xlu0 %818, %v958_v29  }
 0x10b   : > { %v404_v10 = vmul.f32 1.442695, %v400_v30  ;;  %v461_v30 = vld [vmem:[#allocation3 + $0x8] sm:$0xff] }
 0x10c   : > { %v392_v32 = vpop.xlane.xlu0 %391 }
 0x10d   : > { %v970_v34 = vmax.f32 %v965_v31, %v392_v32 }
 0x10e   : > { %v389_v35 = vpop.xlane.xlu1 %388 }
 0x10f   : > { %v402_v36 = vsub.f32 %v965_v31, %v970_v34  ;;  %591 = vst.msk [vmem:[#allocation2 + $0x10] sm:$0xff] %vm276_vm2, %v970_v34  ;;  %v397_v37 = vmax.f32 %v967_v33, %v389_v35  ;;  %424 = vperm.xlu2 %817, %v970_v34   ;;  %v477_v31 = vld [vmem:[#allocation4] sm:$0xff] }
 0x111   : > { %v401_v38 = vsub.f32 %v967_v33, %v397_v37  ;;  %590 = vst.msk [vmem:[#allocation2 + $0x8] sm:$0xff] %vm276_vm2, %v397_v37  ;;  %419 = vperm.xlu1 %819, %v397_v37   ;;  %v408_v11 = vmul.f32 1.442695, %v402_v36 }
 0x113   : > { %v406_v12 = vmul.f32 1.442695, %v401_v38 }
 0x114   : > { %v395_v40 = vpop.xlane.xlu0 %394 }
 0x115   : > { %v983_v41 = vmax.f32 %v980_v39, %v395_v40 }
 0x117   : > { %v403_v42 = vsub.f32 %v980_v39, %v983_v41  ;;  %592 = vst.msk [vmem:[#allocation2 + $0x18] sm:$0xff] %vm276_vm2, %v983_v41  ;;  %429 = vperm.xlu2 %817, %v983_v41  }
 0x119   : > { %v410_v17 = vmul.f32 1.442695, %v403_v42  ;;  %v479_v42 = vld [vmem:[#allocation4 + $0x10] sm:$0xff] }
 0x169   : > { %v425_v49 = vpop.permute.xlu2 %424 }
 0x16a   : > { %v434_v51 = vsub.f32 %v937_v16, %v425_v49 }
 0x16c   : > { %v440_v53 = vmul.f32 1.442695, %v434_v51 }
 0x16e   : > { %820 = vpow2.f32 %v440_v53  ;;  %v478_v53 = vld [vmem:[#allocation4 + $0x8] sm:$0xff] }
 0x171   : > { %v430_v54 = vpop.permute.xlu2 %429 }
 0x172   : > { %v435_v55 = vsub.f32 %v943_v20, %v430_v54 }
 0x174   : > { %v821_v56 = vpop.eup %820  ;;  %v442_v57 = vmul.f32 1.442695, %v435_v55 }
 0x175   : > { %v450_v58 = vsel %vm285_vm1, %v821_v56, 0.0  ;;  %v458_v59 = vpack.c.bf16 %v821_v56, %v821_v56 }
 0x176   : > { %822 = vpow2.f32 %v442_v57  ;;  %451 = vadd.xlane.f32.xlu0 %v450_v58  ;;  %v463_v57 = vld [vmem:[#allocation3 + $0x18] sm:$0xff] }
 0x177   : > { %782 = vmatmul.msk.bf16.vlgmr.msrb.gmra.mxu2 %vm285_vm1, %v458_v59 }
 0x17b   : > { %v415_v60 = vpop.permute.xlu0 %414 }
 0x17c   : > { %v823_v61 = vpop.eup %822  ;;  %v432_v62 = vsub.f32 %v931_v13, %v415_v60 }
 0x17d   : > { %v459_v63 = vpack.c.bf16 %v823_v61, %v823_v61  ;;  %v453_v16 = vsel %vm285_vm1, %v823_v61, 0.0  ;;  %v480_v61 = vld [vmem:[#allocation4 + $0x18] sm:$0xff] }
 0x17e   : > { %v436_v0 = vmul.f32 1.442695, %v432_v62 }
 0x17f   : > { %783 = vmatmul.msk.bf16.vlgmr.msrb.gmra.mxu3 %vm285_vm1, %v459_v63 }
 0x180   : > { %824 = vpow2.f32 %v436_v0 }
 0x183   : > { %v420_v1 = vpop.permute.xlu1 %419 }
 0x184   : > { %v433_v2 = vsub.f32 %v935_v15, %v420_v1 }
 0x186   : > { %v825_v3 = vpop.eup %824  ;;  %v438_v4 = vmul.f32 1.442695, %v433_v2 }
 0x187   : > { %v444_v5 = vsel %vm285_vm1, %v825_v3, 0.0  ;;  %v456_v6 = vpack.c.bf16 %v825_v3, %v825_v3 }
 0x188   : > { %826 = vpow2.f32 %v438_v4  ;;  %445 = vadd.xlane.f32.xlu2 %v444_v5 }
 0x189   : > { %780 = vmatmul.msk.bf16.vlgmr.msrb.gmra.mxu0 %vm285_vm1, %v456_v6  ;;  %828 = vpow2.f32 %v404_v10 }
 0x18a   : > { %830 = vpow2.f32 %v408_v11 }
 0x18b   : > { %832 = vpow2.f32 %v406_v12 }
 0x18c   : > { %834 = vpow2.f32 %v410_v17 }
 0x18e   : > { %v827_v7 = vpop.eup %826 }
 0x18f   : > { %v447_v8 = vsel %vm285_vm1, %v827_v7, 0.0  ;;  %v457_v9 = vpack.c.bf16 %v827_v7, %v827_v7  ;;  %v829_v13 = vpop.eup %828 }
 0x190   : > { %448 = vadd.xlane.f32.xlu1 %v447_v8  ;;  %v831_v14 = vpop.eup %830  ;;  %v464_v27 = vmul.f32 %v829_v13, %v460_v24 }
 0x191   : > { %781 = vmatmul.msk.bf16.vlgmr.msrb.gmra.mxu1 %vm285_vm1, %v457_v9  ;;  %v833_v15 = vpop.eup %832  ;;  %v466_v20 = vmul.f32 %v831_v14, %v462_v18 }
 0x192   : > { %v835_v19 = vpop.eup %834  ;;  %v465_v34 = vmul.f32 %v833_v15, %v461_v30 }
 0x193   : > { %v467_v58 = vmul.f32 %v835_v19, %v463_v57 }
 0x1a0   : > { %483 = vperm.xlu2 %817, %v829_v13  }
 0x1a8   : > { %493 = vperm.xlu2 %817, %v831_v14  }
 0x1a9   : > { %488 = vperm.xlu1 %819, %v833_v15  }
 0x1d1   : > { %454 = vadd.xlane.f32.xlu2 %v453_v16 }
 0x1e9   : > { %v452_v21 = vpop.xlane.xlu0 %451  ;;  %498 = vperm.xlu2 %817, %v835_v19  }
 0x1ea   : > { %v470_v22 = vadd.f32 %v466_v20, %v452_v21 }
 0x1ec   : > { %475 = vst.msk [vmem:[#allocation3 + $0x10] sm:$0xff] %vm276_vm2, %v470_v22 }
 0x1f3   : > { %v598_v23 = vld [vmem:[#allocation3 + $0x10] sm:$0xff] }
 0x1f4   : > { %836 = vrcp.f32 %v598_v23 }
 0x1fa   : > { %v837_v25 = vpop.eup %836  ;;  %v558_v26 = vpop.f32.mrf.mxu2 }
 0x1fb   : > { %v446_v28 = vpop.xlane.xlu2 %445  ;;  %620 = vperm.xlu1 %819, %v837_v25  }
 0x1fc   : > { %v468_v29 = vadd.f32 %v464_v27, %v446_v28 }
 0x1fe   : > { %473 = vst.msk [vmem:[#allocation3] sm:$0xff] %vm276_vm2, %v468_v29 }
 0x202   : > { %v560_v32 = vpop.f32.mrf.mxu2  ;;  %v577_v33 = vpop.f32.mrf.mxu3 }
 0x203   : > { %v484_v35 = vpop.permute.xlu2 %483  ;;  %v449_v36 = vpop.xlane.xlu1 %448 }
 0x204   : > { %v501_v37 = vmul.f32 %v484_v35, %v477_v31  ;;  %v469_v38 = vadd.f32 %v465_v34, %v449_v36 }
 0x205   : > { %v596_v39 = vld [vmem:[#allocation3] sm:$0xff] }
 0x206   : > { %474 = vst.msk [vmem:[#allocation3 + $0x8] sm:$0xff] %vm276_vm2, %v469_v38  ;;  %v520_v40 = vpop.f32.mrf.mxu0  ;;  %838 = vrcp.f32 %v596_v39 }
 0x207   : > { %v581_v41 = vadd.f32 %v520_v40, %v501_v37 }
 0x209   : > { %585 = vst.msk [vmem:[#allocation4] sm:$0xff] %vm285_vm1, %v581_v41 }
 0x20a   : > { %v579_v43 = vpop.f32.mrf.mxu3 }
 0x20b   : > { %v494_v44 = vpop.permute.xlu2 %493 }
 0x20c   : > { %v839_v45 = vpop.eup %838  ;;  %v503_v46 = vmul.f32 %v494_v44, %v479_v42 }
 0x20d   : > { %610 = vperm.xlu0 %818, %v839_v45   ;;  %v597_v47 = vld [vmem:[#allocation3 + $0x8] sm:$0xff] }
 0x20e   : > { %v583_v48 = vadd.f32 %v558_v26, %v503_v46  ;;  %v522_v49 = vpop.f32.mrf.mxu0  ;;  %v539_v50 = vpop.f32.mrf.mxu1  ;;  %840 = vrcp.f32 %v597_v47 }
 0x210   : > { %587 = vst.msk [vmem:[#allocation4 + $0x10] sm:$0xff] %vm285_vm1, %v583_v48  ;;  %v604_v12 = vld [vmem:[#allocation4] sm:$0xff] }
 0x214   : > { %v841_v51 = vpop.eup %840 }
 0x215   : > { %615 = vperm.xlu2 %817, %v841_v51  }
 0x216   : > { %v541_v52 = vpop.f32.mrf.mxu1 }
 0x217   : > { %v606_v3 = vld [vmem:[#allocation4 + $0x10] sm:$0xff] }
 0x21b   : > { %v489_v54 = vpop.permute.xlu1 %488 }
 0x21c   : > { %v502_v55 = vmul.f32 %v489_v54, %v478_v53 }
 0x21e   : > { %v582_v56 = vadd.f32 %v539_v50, %v502_v55 }
 0x220   : > { %586 = vst.msk [vmem:[#allocation4 + $0x8] sm:$0xff] %vm285_vm1, %v582_v56 }
 0x227   : > { %v605_v6 = vld [vmem:[#allocation4 + $0x8] sm:$0xff] }
 0x244   : > { %v455_v59 = vpop.xlane.xlu2 %454 }
 0x245   : > { %v471_v60 = vadd.f32 %v467_v58, %v455_v59 }
 0x247   : > { %476 = vst.msk [vmem:[#allocation3 + $0x18] sm:$0xff] %vm276_vm2, %v471_v60 }
 0x24c   : > { %v499_v62 = vpop.permute.xlu2 %498 }
 0x24d   : > { %v504_v63 = vmul.f32 %v499_v62, %v480_v61 }
 0x24e   : > { %v599_v0 = vld [vmem:[#allocation3 + $0x18] sm:$0xff] }
 0x24f   : > { %v584_v1 = vadd.f32 %v577_v33, %v504_v63  ;;  %842 = vrcp.f32 %v599_v0 }
 0x251   : > { %588 = vst.msk [vmem:[#allocation4 + $0x18] sm:$0xff] %vm285_vm1, %v584_v1 }
 0x255   : > { %v843_v2 = vpop.eup %842 }
 0x256   : > { %625 = vperm.xlu2 %817, %v843_v2  }
 0x258   : > { %v607_v15 = vld [vmem:[#allocation4 + $0x18] sm:$0xff] }
 0x26d   : > { %v621_v4 = vpop.permute.xlu1 %620 }
 0x26e   : > { %v630_v5 = vmul.f32 %v621_v4, %v606_v3 }
 0x26f   : > { %v616_v7 = vpop.permute.xlu2 %615 }
 0x270   : > { %v634_v8 = vpack.c.bf16 %v630_v5, %v630_v5  ;;  %v629_v9 = vmul.f32 %v616_v7, %v605_v6 }
 0x272   : > { %639 = vst.msk [vmem:[%s270_s28 + $0x8] sm:$0xf] %vm636_vm3, %v634_v8  ;;  %v633_v10 = vpack.c.bf16 %v629_v9, %v629_v9 }
 0x274   : > { %638 = vst.msk [vmem:[%s270_s28 + $0x4] sm:$0xf] %vm636_vm3, %v633_v10 }
 0x27f   : > { %v611_v11 = vpop.permute.xlu0 %610 }
 0x280   : > { %v628_v13 = vmul.f32 %v611_v11, %v604_v12 }
 0x282   : > { %v632_v14 = vpack.c.bf16 %v628_v13, %v628_v13 }
 0x284   : > { %637 = vst.msk [vmem:[%s270_s28] sm:$0xf] %vm636_vm3, %v632_v14 }
 0x2b0   : > { %v626_v16 = vpop.permute.xlu2 %625 }
 0x2b1   : > { %v631_v17 = vmul.f32 %v626_v16, %v607_v15 }
 0x2b3   : > { %v635_v18 = vpack.c.bf16 %v631_v17, %v631_v17 }
 0x2b5   : > { %640 = vst.msk [vmem:[%s270_s28 + $0xc] sm:$0xf] %vm636_vm3, %v635_v18 }
 0x2b6 PF: > { %s13_s14 = sadd.s32 1, %s866_s14   ;;  %s1045_s12 = smov %s862_s13 }
 0x2b7   : > { %p10_p5 = scmp.ge.s32.totalorder %s13_s14, 4   ;;  %s1046_s13 = smov %s1048_s15 }
 0x2b9   :  { %12 = sbr.rel (!%p10_p5) target bundleno = 2 (0x2), region = 76 }

</bundles_post_ra>
